<compile_context>
chip_gen: v7x
topology: tpu7x:2x2x1
jax: 0.10.0
libtpu: 0.0.40
codegen_flags: <defaults>
</compile_context>

<pallas_src>
import functools

import jax
import jax.numpy as jnp
from jax.experimental import pallas as pl
from jax.experimental.pallas import tpu as pltpu


_TAPS = tuple((ky, kx) for ky in (-1, 0, 1) for kx in (-1, 0, 1))


def _round_up(v, m):
    return (v + m - 1) // m * m


def _fused_nconvrelu_kernel(x_ref, w_ref, b_ref, m_ref, o_ref, buf_ref, *,
                            n_layers, H, W, cout, negative_slope):
    """All n (3x3 conv + LeakyReLU) layers for one batch element.

    x_ref  : (1, Cmax, HW)            input activation, channels zero-padded to Cmax
    w_ref  : (n_layers, Cmax, 9*Cmax) packed im2col weights (zero-padded)
    b_ref  : (n_layers, Cmax, 1)      packed bias (zero-padded)
    m_ref  : (2, 1, HW)               left/right image-edge masks (0/1 f32)
    o_ref  : (1, cout, HW)            output activation
    buf_ref: (Cmax, HW + 2*(W+1))     VMEM halo buffer (scratch)
    """
    HW = H * W
    halo = W + 1

    # Zero the halo buffer; the halo regions stay zero across all layers.
    buf_ref[...] = jnp.zeros_like(buf_ref)

    # Hoisted edge masks, shared by every layer (avoid per-iter broadcasts).
    m_left = m_ref[0]     # (1, HW): 0 where w == 0      (used for kx = -1 taps)
    m_right = m_ref[1]    # (1, HW): 0 where w == W - 1  (used for kx = +1 taps)

    act = x_ref[0].astype(jnp.float32)                 # (Cmax, HW), lane-dense
    for l in range(n_layers):                          # static unroll over layers
        buf_ref[:, pl.ds(halo, HW)] = act              # activation inside halo buf

        # Build im2col patches: 9 shifted lane-windows, sublane-aligned concat.
        parts = []
        for ky, kx in _TAPS:
            off = ky * W + kx
            win = buf_ref[:, pl.ds(halo + off, HW)]    # (Cmax, HW) shifted tap
            if kx == -1:
                win = win * m_left
            elif kx == 1:
                win = win * m_right
            parts.append(win)
        patches = jnp.concatenate(parts, axis=0)       # (9*Cmax, HW)

        # One MXU matmul per layer: (Cmax, 9*Cmax) @ (9*Cmax, HW) -> (Cmax, HW).
        y = jnp.dot(w_ref[l], patches, preferred_element_type=jnp.float32)
        y = y + b_ref[l]                               # (Cmax, 1) lane-broadcast
        act = jnp.where(y >= 0, y, negative_slope * y)  # LeakyReLU(0.01)

    o_ref[0] = act[:cout].astype(o_ref.dtype)          # lane-dense store


def nconvrelu_forward(x_nchw, params, negative_slope=0.01):
    """Fused nConvReLU forward pass: NCHW in, NCHW out."""
    B, Cin, H, W = x_nchw.shape
    HW = H * W
    n_layers = len(params)
    Cout = params[0][0].shape[0]
    cmax = _round_up(max(Cin, Cout), 8)    # sublane-aligned common channel count

    # ---- one-time packing of params into im2col layout (tiny; done in XLA) ----
    w_list, b_list = [], []
    for w_oihw, b in params:
        co, ci = w_oihw.shape[0], w_oihw.shape[1]
        # (Co, Ci, 3, 3) -> (Co, 3, 3, Ci) -> (Co, 9, Ci), pad channels to cmax.
        wt = jnp.transpose(w_oihw, (0, 2, 3, 1)).reshape(co, 9, ci)
        wt = jnp.pad(wt, ((0, cmax - co), (0, 0), (0, cmax - ci)))
        w_list.append(wt.reshape(cmax, 9 * cmax))      # column = tap*cmax + c
        b_list.append(jnp.pad(b, (0, cmax - co)))
    w_all = jnp.stack(w_list, axis=0)                  # (n_layers, cmax, 9*cmax)
    b_all = jnp.stack(b_list, axis=0)[:, :, None]      # (n_layers, cmax, 1)

    # Left/right image-edge masks in the flattened H*W lane layout.
    w_idx = jnp.arange(HW, dtype=jnp.int32) % W
    masks = jnp.stack([(w_idx != 0), (w_idx != W - 1)]).astype(jnp.float32)
    masks = masks.reshape(2, 1, HW)

    # NCHW -> (B, cmax, HW): reshape is free; one-time tiny channel pad of the input.
    x_in = x_nchw.reshape(B, Cin, HW)
    if Cin < cmax:
        x_in = jnp.pad(x_in, ((0, 0), (0, cmax - Cin), (0, 0)))

    kernel = functools.partial(
        _fused_nconvrelu_kernel, n_layers=n_layers, H=H, W=W, cout=Cout,
        negative_slope=negative_slope)

    out = pl.pallas_call(
        kernel,
        out_shape=jax.ShapeDtypeStruct((B, Cout, HW), x_nchw.dtype),
        grid_spec=pltpu.PrefetchScalarGridSpec(
            num_scalar_prefetch=0,
            grid=(B,),
            in_specs=[
                pl.BlockSpec((1, cmax, HW), lambda b: (b, 0, 0)),
                pl.BlockSpec((n_layers, cmax, 9 * cmax), lambda b: (0, 0, 0)),
                pl.BlockSpec((n_layers, cmax, 1), lambda b: (0, 0, 0)),
                pl.BlockSpec((2, 1, HW), lambda b: (0, 0, 0)),
            ],
            out_specs=pl.BlockSpec((1, Cout, HW), lambda b: (b, 0, 0)),
            scratch_shapes=[pltpu.VMEM((cmax, HW + 2 * (W + 1)), jnp.float32)],
        ),
        compiler_params=pltpu.CompilerParams(
            dimension_semantics=("parallel",),
            vmem_limit_bytes=32 * 1024 * 1024,
        ),
    )(x_in, w_all, b_all, masks)
    return out.reshape(B, Cout, H, W)


def init_nconvrelu_params(key, in_channels, out_channels, n_layers):
    """Deterministic init matching nn.Conv2d: weights stored PyTorch-style OIHW."""
    params = []
    cin = in_channels
    for _ in range(n_layers):
        key, kw, kb = jax.random.split(key, 3)
        fan_in = cin * 9
        bound = 1.0 / (fan_in ** 0.5)
        w = jax.random.uniform(kw, (out_channels, cin, 3, 3), jnp.float32,
                               -bound, bound)
        b = jax.random.uniform(kb, (out_channels,), jnp.float32, -bound, bound)
        params.append((w, b))
        cin = out_channels
    return params


if __name__ == "__main__":
    key = jax.random.PRNGKey(0)
    key, kx = jax.random.split(key)

    B, Cin, Cout, H, W = 2, 4, 8, 16, 16
    n_layers = 2

    x = jax.random.normal(kx, (B, Cin, H, W), jnp.float32)   # NCHW like PyTorch
    params = init_nconvrelu_params(key, Cin, Cout, n_layers)

    out = jax.jit(nconvrelu_forward)(x, params)
    out = jax.block_until_ready(out)
    assert out.shape == (B, Cout, H, W), out.shape

    # Pure-JAX reference: lax conv (NCHW/OIHW) + bias + LeakyReLU(0.01).
    ref = x
    for w_oihw, b in params:
        ref = jax.lax.conv_general_dilated(
            ref, w_oihw, window_strides=(1, 1), padding=((1, 1), (1, 1)),
            dimension_numbers=("NCHW", "OIHW", "NCHW"))
        ref = ref + b[None, :, None, None]
        ref = jnp.where(ref >= 0, ref, 0.01 * ref)
    max_err = float(jnp.max(jnp.abs(out - ref)))
    assert jnp.allclose(out, ref, atol=5e-4, rtol=5e-4), max_err

    print("KERNEL_OK")
</pallas_src>

<mosaic_0001>
module attributes {stable_mosaic.version = 11 : i64} {
  func.func @_fused_nconvrelu_kernel(%arg0: i32, %arg1: memref<1x8x256xf32, #tpu.memory_space<vmem>>, %arg2: memref<2x8x72xf32, #tpu.memory_space<vmem>>, %arg3: memref<2x8x1xf32, #tpu.memory_space<vmem>>, %arg4: memref<2x1x256xf32, #tpu.memory_space<vmem>>, %arg5: memref<1x8x256xf32, #tpu.memory_space<vmem>>, %arg6: memref<8x290xf32, #tpu.memory_space<vmem>>) attributes {dimension_semantics = [#tpu.dimension_semantics<parallel>], iteration_bounds = array<i64: 2>, scalar_prefetch = 0 : i64, scratch_operands = 1 : i64, tpu.core_type = #tpu.core_type<tc>, window_params = [{transform_indices = @transform_0, window_bounds = array<i64: 1, 8, 256>}, {pipeline_mode = #tpu.pipeline_mode<synchronous>, transform_indices = @transform_1, window_bounds = array<i64: 2, 8, 72>}, {pipeline_mode = #tpu.pipeline_mode<synchronous>, transform_indices = @transform_2, window_bounds = array<i64: 2, 8, 1>}, {pipeline_mode = #tpu.pipeline_mode<synchronous>, transform_indices = @transform_3, window_bounds = array<i64: 2, 1, 256>}, {transform_indices = @transform_4, window_bounds = array<i64: 1, 8, 256>}]} {
    %cst = arith.constant 0.000000e+00 : f32
    %0 = vector.broadcast %cst : f32 to vector<8x290xf32>
    %c0 = arith.constant 0 : index
    %c0_0 = arith.constant 0 : index
    %1 = vector.load %arg6[%c0, %c0_0] : memref<8x290xf32, #tpu.memory_space<vmem>>, vector<8x290xf32>
    tpu.vector_store %arg6[%c0, %c0_0], %0 {strides = array<i32>} : memref<8x290xf32, #tpu.memory_space<vmem>>, vector<8x290xf32>,
    %c0_1 = arith.constant 0 : index
    %c0_2 = arith.constant 0 : index
    %c0_3 = arith.constant 0 : index
    %2 = vector.load %arg4[%c0_1, %c0_2, %c0_3] : memref<2x1x256xf32, #tpu.memory_space<vmem>>, vector<1x1x256xf32>
    %3 = vector.shape_cast %2 : vector<1x1x256xf32> to vector<1x256xf32>
    %c1 = arith.constant 1 : index
    %c0_4 = arith.constant 0 : index
    %c0_5 = arith.constant 0 : index
    %4 = vector.load %arg4[%c1, %c0_4, %c0_5] : memref<2x1x256xf32, #tpu.memory_space<vmem>>, vector<1x1x256xf32>
    %5 = vector.shape_cast %4 : vector<1x1x256xf32> to vector<1x256xf32>
    %c0_6 = arith.constant 0 : index
    %c0_7 = arith.constant 0 : index
    %c0_8 = arith.constant 0 : index
    %6 = vector.load %arg1[%c0_6, %c0_7, %c0_8] : memref<1x8x256xf32, #tpu.memory_space<vmem>>, vector<1x8x256xf32>
    %7 = vector.shape_cast %6 : vector<1x8x256xf32> to vector<8x256xf32>
    %c0_9 = arith.constant 0 : index
    %c17 = arith.constant 17 : index
    %8 = vector.load %arg6[%c0_9, %c17] : memref<8x290xf32, #tpu.memory_space<vmem>>, vector<8x256xf32>
    tpu.vector_store %arg6[%c0_9, %c17], %7 {strides = array<i32>} : memref<8x290xf32, #tpu.memory_space<vmem>>, vector<8x256xf32>,
    %c0_10 = arith.constant 0 : index
    %c0_11 = arith.constant 0 : index
    %9 = vector.load %arg6[%c0_10, %c0_11] : memref<8x290xf32, #tpu.memory_space<vmem>>, vector<8x256xf32>
    %10 = vector.broadcast %3 : vector<1x256xf32> to vector<8x256xf32>
    %11 = arith.mulf %9, %10 : vector<8x256xf32>
    %c0_12 = arith.constant 0 : index
    %c1_13 = arith.constant 1 : index
    %12 = vector.load %arg6[%c0_12, %c1_13] : memref<8x290xf32, #tpu.memory_space<vmem>>, vector<8x256xf32>
    %c0_14 = arith.constant 0 : index
    %c2 = arith.constant 2 : index
    %13 = vector.load %arg6[%c0_14, %c2] : memref<8x290xf32, #tpu.memory_space<vmem>>, vector<8x256xf32>
    %14 = vector.broadcast %5 : vector<1x256xf32> to vector<8x256xf32>
    %15 = arith.mulf %13, %14 : vector<8x256xf32>
    %c0_15 = arith.constant 0 : index
    %c16 = arith.constant 16 : index
    %16 = vector.load %arg6[%c0_15, %c16] : memref<8x290xf32, #tpu.memory_space<vmem>>, vector<8x256xf32>
    %17 = vector.broadcast %3 : vector<1x256xf32> to vector<8x256xf32>
    %18 = arith.mulf %16, %17 : vector<8x256xf32>
    %c0_16 = arith.constant 0 : index
    %c17_17 = arith.constant 17 : index
    %19 = vector.load %arg6[%c0_16, %c17_17] : memref<8x290xf32, #tpu.memory_space<vmem>>, vector<8x256xf32>
    %c0_18 = arith.constant 0 : index
    %c18 = arith.constant 18 : index
    %20 = vector.load %arg6[%c0_18, %c18] : memref<8x290xf32, #tpu.memory_space<vmem>>, vector<8x256xf32>
    %21 = vector.broadcast %5 : vector<1x256xf32> to vector<8x256xf32>
    %22 = arith.mulf %20, %21 : vector<8x256xf32>
    %c0_19 = arith.constant 0 : index
    %c32 = arith.constant 32 : index
    %23 = vector.load %arg6[%c0_19, %c32] : memref<8x290xf32, #tpu.memory_space<vmem>>, vector<8x256xf32>
    %24 = vector.broadcast %3 : vector<1x256xf32> to vector<8x256xf32>
    %25 = arith.mulf %23, %24 : vector<8x256xf32>
    %c0_20 = arith.constant 0 : index
    %c33 = arith.constant 33 : index
    %26 = vector.load %arg6[%c0_20, %c33] : memref<8x290xf32, #tpu.memory_space<vmem>>, vector<8x256xf32>
    %c0_21 = arith.constant 0 : index
    %c34 = arith.constant 34 : index
    %27 = vector.load %arg6[%c0_21, %c34] : memref<8x290xf32, #tpu.memory_space<vmem>>, vector<8x256xf32>
    %28 = vector.broadcast %5 : vector<1x256xf32> to vector<8x256xf32>
    %29 = arith.mulf %27, %28 : vector<8x256xf32>
    %30 = tpu.concatenate %11, %12, %15, %18, %19, %22, %25, %26, %29 in 0 : vector<8x256xf32>, vector<8x256xf32>, vector<8x256xf32>, vector<8x256xf32>, vector<8x256xf32>, vector<8x256xf32>, vector<8x256xf32>, vector<8x256xf32>, vector<8x256xf32> -> vector<72x256xf32>
    %c0_22 = arith.constant 0 : index
    %c0_23 = arith.constant 0 : index
    %c0_24 = arith.constant 0 : index
    %31 = vector.load %arg2[%c0_22, %c0_23, %c0_24] : memref<2x8x72xf32, #tpu.memory_space<vmem>>, vector<1x8x72xf32>
    %32 = vector.shape_cast %31 : vector<1x8x72xf32> to vector<8x72xf32>
    %cst_25 = arith.constant dense<0.000000e+00> : vector<8x256xf32>
    %33 = tpu.matmul %32, %30, %cst_25 {dimension_numbers = #tpu.dot_dimension_numbers<[1], [0], [0], [1], [0, 0, 1, 1], [], []>} : vector<8x72xf32>, vector<72x256xf32>, vector<8x256xf32> -> vector<8x256xf32>
    %c0_26 = arith.constant 0 : index
    %c0_27 = arith.constant 0 : index
    %c0_28 = arith.constant 0 : index
    %34 = vector.load %arg3[%c0_26, %c0_27, %c0_28] : memref<2x8x1xf32, #tpu.memory_space<vmem>>, vector<1x8x1xf32>
    %35 = vector.shape_cast %34 : vector<1x8x1xf32> to vector<8x1xf32>
    %36 = vector.broadcast %35 : vector<8x1xf32> to vector<8x256xf32>
    %37 = arith.addf %33, %36 : vector<8x256xf32>
    %cst_29 = arith.constant 0.000000e+00 : f32
    %38 = vector.broadcast %cst_29 : f32 to vector<8x256xf32>
    %39 = arith.cmpf oge, %37, %38 : vector<8x256xf32>
    %cst_30 = arith.constant 0.00999999977 : f32
    %40 = vector.broadcast %cst_30 : f32 to vector<8x256xf32>
    %41 = arith.mulf %40, %37 : vector<8x256xf32>
    %42 = arith.select %39, %37, %41 : vector<8x256xi1>, vector<8x256xf32>
    %c0_31 = arith.constant 0 : index
    %c17_32 = arith.constant 17 : index
    %43 = vector.load %arg6[%c0_31, %c17_32] : memref<8x290xf32, #tpu.memory_space<vmem>>, vector<8x256xf32>
    tpu.vector_store %arg6[%c0_31, %c17_32], %42 {strides = array<i32>} : memref<8x290xf32, #tpu.memory_space<vmem>>, vector<8x256xf32>,
    %c0_33 = arith.constant 0 : index
    %c0_34 = arith.constant 0 : index
    %44 = vector.load %arg6[%c0_33, %c0_34] : memref<8x290xf32, #tpu.memory_space<vmem>>, vector<8x256xf32>
    %45 = vector.broadcast %3 : vector<1x256xf32> to vector<8x256xf32>
    %46 = arith.mulf %44, %45 : vector<8x256xf32>
    %c0_35 = arith.constant 0 : index
    %c1_36 = arith.constant 1 : index
    %47 = vector.load %arg6[%c0_35, %c1_36] : memref<8x290xf32, #tpu.memory_space<vmem>>, vector<8x256xf32>
    %c0_37 = arith.constant 0 : index
    %c2_38 = arith.constant 2 : index
    %48 = vector.load %arg6[%c0_37, %c2_38] : memref<8x290xf32, #tpu.memory_space<vmem>>, vector<8x256xf32>
    %49 = vector.broadcast %5 : vector<1x256xf32> to vector<8x256xf32>
    %50 = arith.mulf %48, %49 : vector<8x256xf32>
    %c0_39 = arith.constant 0 : index
    %c16_40 = arith.constant 16 : index
    %51 = vector.load %arg6[%c0_39, %c16_40] : memref<8x290xf32, #tpu.memory_space<vmem>>, vector<8x256xf32>
    %52 = vector.broadcast %3 : vector<1x256xf32> to vector<8x256xf32>
    %53 = arith.mulf %51, %52 : vector<8x256xf32>
    %c0_41 = arith.constant 0 : index
    %c17_42 = arith.constant 17 : index
    %54 = vector.load %arg6[%c0_41, %c17_42] : memref<8x290xf32, #tpu.memory_space<vmem>>, vector<8x256xf32>
    %c0_43 = arith.constant 0 : index
    %c18_44 = arith.constant 18 : index
    %55 = vector.load %arg6[%c0_43, %c18_44] : memref<8x290xf32, #tpu.memory_space<vmem>>, vector<8x256xf32>
    %56 = vector.broadcast %5 : vector<1x256xf32> to vector<8x256xf32>
    %57 = arith.mulf %55, %56 : vector<8x256xf32>
    %c0_45 = arith.constant 0 : index
    %c32_46 = arith.constant 32 : index
    %58 = vector.load %arg6[%c0_45, %c32_46] : memref<8x290xf32, #tpu.memory_space<vmem>>, vector<8x256xf32>
    %59 = vector.broadcast %3 : vector<1x256xf32> to vector<8x256xf32>
    %60 = arith.mulf %58, %59 : vector<8x256xf32>
    %c0_47 = arith.constant 0 : index
    %c33_48 = arith.constant 33 : index
    %61 = vector.load %arg6[%c0_47, %c33_48] : memref<8x290xf32, #tpu.memory_space<vmem>>, vector<8x256xf32>
    %c0_49 = arith.constant 0 : index
    %c34_50 = arith.constant 34 : index
    %62 = vector.load %arg6[%c0_49, %c34_50] : memref<8x290xf32, #tpu.memory_space<vmem>>, vector<8x256xf32>
    %63 = vector.broadcast %5 : vector<1x256xf32> to vector<8x256xf32>
    %64 = arith.mulf %62, %63 : vector<8x256xf32>
    %65 = tpu.concatenate %46, %47, %50, %53, %54, %57, %60, %61, %64 in 0 : vector<8x256xf32>, vector<8x256xf32>, vector<8x256xf32>, vector<8x256xf32>, vector<8x256xf32>, vector<8x256xf32>, vector<8x256xf32>, vector<8x256xf32>, vector<8x256xf32> -> vector<72x256xf32>
    %c1_51 = arith.constant 1 : index
    %c0_52 = arith.constant 0 : index
    %c0_53 = arith.constant 0 : index
    %66 = vector.load %arg2[%c1_51, %c0_52, %c0_53] : memref<2x8x72xf32, #tpu.memory_space<vmem>>, vector<1x8x72xf32>
    %67 = vector.shape_cast %66 : vector<1x8x72xf32> to vector<8x72xf32>
    %cst_54 = arith.constant dense<0.000000e+00> : vector<8x256xf32>
    %68 = tpu.matmul %67, %65, %cst_54 {dimension_numbers = #tpu.dot_dimension_numbers<[1], [0], [0], [1], [0, 0, 1, 1], [], []>} : vector<8x72xf32>, vector<72x256xf32>, vector<8x256xf32> -> vector<8x256xf32>
    %c1_55 = arith.constant 1 : index
    %c0_56 = arith.constant 0 : index
    %c0_57 = arith.constant 0 : index
    %69 = vector.load %arg3[%c1_55, %c0_56, %c0_57] : memref<2x8x1xf32, #tpu.memory_space<vmem>>, vector<1x8x1xf32>
    %70 = vector.shape_cast %69 : vector<1x8x1xf32> to vector<8x1xf32>
    %71 = vector.broadcast %70 : vector<8x1xf32> to vector<8x256xf32>
    %72 = arith.addf %68, %71 : vector<8x256xf32>
    %cst_58 = arith.constant 0.000000e+00 : f32
    %73 = vector.broadcast %cst_58 : f32 to vector<8x256xf32>
    %74 = arith.cmpf oge, %72, %73 : vector<8x256xf32>
    %cst_59 = arith.constant 0.00999999977 : f32
    %75 = vector.broadcast %cst_59 : f32 to vector<8x256xf32>
    %76 = arith.mulf %75, %72 : vector<8x256xf32>
    %77 = arith.select %74, %72, %76 : vector<8x256xi1>, vector<8x256xf32>
    %c0_60 = arith.constant 0 : index
    %c0_61 = arith.constant 0 : index
    %c0_62 = arith.constant 0 : index
    %78 = vector.load %arg5[%c0_60, %c0_61, %c0_62] : memref<1x8x256xf32, #tpu.memory_space<vmem>>, vector<1x8x256xf32>
    %79 = vector.shape_cast %78 : vector<1x8x256xf32> to vector<8x256xf32>
    %80 = vector.shape_cast %77 : vector<8x256xf32> to vector<1x8x256xf32>
    tpu.vector_store %arg5[%c0_60, %c0_61, %c0_62], %80 {strides = array<i32>} : memref<1x8x256xf32, #tpu.memory_space<vmem>>, vector<1x8x256xf32>,
    return
  }
  func.func @transform_0(%arg0: i32) -> (i32, i32, i32) {
    %c0_i32 = arith.constant 0 : i32
    %c0_i32_0 = arith.constant 0 : i32
    %c0_i32_1 = arith.constant 0 : i32
    return %arg0, %c0_i32, %c0_i32_0 : i32, i32, i32
  }
  func.func @transform_1(%arg0: i32) -> (i32, i32, i32) {
    %c0_i32 = arith.constant 0 : i32
    %c0_i32_0 = arith.constant 0 : i32
    %c0_i32_1 = arith.constant 0 : i32
    %c0_i32_2 = arith.constant 0 : i32
    return %c0_i32, %c0_i32_0, %c0_i32_1 : i32, i32, i32
  }
  func.func @transform_2(%arg0: i32) -> (i32, i32, i32) {
    %c0_i32 = arith.constant 0 : i32
    %c0_i32_0 = arith.constant 0 : i32
    %c0_i32_1 = arith.constant 0 : i32
    %c0_i32_2 = arith.constant 0 : i32
    return %c0_i32, %c0_i32_0, %c0_i32_1 : i32, i32, i32
  }
  func.func @transform_3(%arg0: i32) -> (i32, i32, i32) {
    %c0_i32 = arith.constant 0 : i32
    %c0_i32_0 = arith.constant 0 : i32
    %c0_i32_1 = arith.constant 0 : i32
    %c0_i32_2 = arith.constant 0 : i32
    return %c0_i32, %c0_i32_0, %c0_i32_1 : i32, i32, i32
  }
  func.func @transform_4(%arg0: i32) -> (i32, i32, i32) {
    %c0_i32 = arith.constant 0 : i32
    %c0_i32_0 = arith.constant 0 : i32
    %c0_i32_1 = arith.constant 0 : i32
    return %arg0, %c0_i32, %c0_i32_0 : i32, i32, i32
  }
}

</mosaic_0001>

<bundles_post_ra>
// kernel: nconvrelu_forward.1
= control target key start
LH: loop header
LB: loop body
LE: loop exit
PB: predicated region body
PF: predicated region fallthrough
CT: control target
= control target key end

     0   :  { %s972_s15 = smov 0   ;;  %s1196_s0 = inlined_call_operand.vmem [shape: f32[2,8,256], index: 0, kind: input, shape index: {}]   ;;  %s1197_s1 = inlined_call_operand.vmem [shape: f32[2,8,72], index: 1, kind: input, shape index: {}]   ;;  %s1198_s2 = inlined_call_operand.vmem [shape: f32[2,8,1], index: 2, kind: input, shape index: {}]   ;;  %s1199_s3 = inlined_call_operand.vmem [shape: f32[2,1,256], index: 3, kind: input, shape index: {}]   ;;  %s1200_s4 = inlined_call_operand.vmem [shape: f32[2,8,256], index: 4, kind: output, shape index: {}]  }
   0x1 LB: > { %s777_s16 = sadd.s32 4294967295, %s929_s15   ;;  %p781_p0 = scmp.ge.s32.totalorder %s929_s15, 1  ;;  %s929_s15 = sphi %s972_s15, %s14_s15  }
   0x2   : > { %p162_p1 = scmp.lt.s32.totalorder %s929_s15, 3 }
   0x4   : > { %p163_p2 = pnand %p781_p0, %p162_p1 }
   0x5   : > { %p188_p3 = scmp.lt.s32.totalorder (!%p163_p2), %s777_s16, 1  ;;  %v225_v0 = vlaneseq (!%p163_p2)  ;;  %vm200_vm0 = vcmask (!%p163_p2), 277504   ;;  %v931_v2 = vmov (!%p163_p2), 0.0   ;;  %v786_v3 = vld [vmem:[%s1199_s3 + $0x2] sm:$0x3] (!%p163_p2)  ;;  %s932_s23 = smov (!%p163_p2), 17  }
   0x6   : > { %166 = sbr.rel (%p163_p2) target bundleno = 1001 (0x3e9), region = 36  ;;  %198 = vst [vmem:[#allocation2] sm:$0xff] (!%p163_p2), %v931_v2  ;;  %201 = vst.msk [vmem:[#allocation2 + $0x10] sm:$0xff] (!%p163_p2), %vm200_vm0, %v931_v2  ;;  %487 = vmatprep.mubr.f32.mxu0 (!%p163_p2), %v931_v2  ;;  %707 = vmatprep.mubr.f32.mxu1 (!%p163_p2), %v931_v2  ;;  %s933_s24 = smov (!%p163_p2), 2   ;;  %v202_v10 = vld [vmem:[%s1199_s3] sm:$0x3] (!%p163_p2) }
   0x7   : > { %v226_v1 = vshrl.u32 (!%p163_p2), %v225_v0, 7  ;;  %s934_s27 = smov (!%p163_p2), 16   ;;  %s935_s28 = smov (!%p163_p2), 18   ;;  %vm218_vm1 = vcmask (!%p163_p2), 1047688   ;;  %vm213_vm2 = vcmask (!%p163_p2), 138240   ;;  %vm263_vm3 = vcmask (!%p163_p2), 130048  }
   0x8   : > { %s936_s29 = smov (!%p163_p2), 32   ;;  %s937_s30 = smov (!%p163_p2), 34   ;;  %vm275_vm4 = vcmask (!%p163_p2), 146432   ;;  %vm251_vm5 = vcmask (!%p163_p2), 15360   ;;  %vm287_vm6 = vcmask (!%p163_p2), 261120   ;;  %v945_v50 = vmov (!%p163_p2), 0  }
   0x9   : > { %v227_v4 = vsub.s32 (!%p163_p2), 0, %v226_v1  ;;  %v231_v5 = vsub.s32 (!%p163_p2), 1, %v226_v1  ;;  %s938_s5 = smov (!%p163_p2), 111   ;;  %s939_s6 = smov (!%p163_p2), 127   ;;  %886 = vset.pattern.permute.xlu1 (!%p163_p2), %v945_v50  ;;  %922 = vset.pattern.permute.xlu0 (!%p163_p2), %v945_v50  ;;  %v413_v53 = vld [vmem:[%s1198_s2] sm:$0xff] (!%p163_p2)  ;;  %vm315_vm7 = vcmask (!%p163_p2), 1039360  }
   0xa   : > { %s940_s7 = smov (!%p163_p2), 112   ;;  %s941_s8 = smov (!%p163_p2), 110   ;;  %vm343_vm8 = vcmask (!%p163_p2), 916480   ;;  %vm329_vm9 = vcmask (!%p163_p2), 1031168   ;;  %vm368_vm10 = vcmask (!%p163_p2), 900096   ;;  %vm354_vm11 = vcmask (!%p163_p2), 908288  }
   0xb   : > { %v242_v7 = vrot.slane (!%p163_p2), %v786_v3, %v227_v4  ;;  %v246_v9 = vrot.slane (!%p163_p2), %v786_v3, %v231_v5  ;;  %v997_v11 = vrot.slane (!%p163_p2), %v202_v10, %v227_v4  ;;  %v999_v12 = vrot.slane (!%p163_p2), %v202_v10, %v231_v5  ;;  %s942_s9 = smov (!%p163_p2), 126   ;;  %s943_s10 = smov (!%p163_p2), 95  }
   0xc   : > { %s944_s11 = smov (!%p163_p2), 96   ;;  %s946_s12 = smov (!%p163_p2), 94   ;;  %vm393_vm12 = vcmask (!%p163_p2), 777216   ;;  %vm382_vm13 = vcmask (!%p163_p2), 785408   ;;  %vm407_vm14 = vcmask (!%p163_p2), 769024   ;;  %vm419_vm15 = vcmask (!%p163_p2), 588800  }
   0xd   : > { %s1202_s16 = smov (!%p188_p3, %s777_s16), 1  ;;  %247 = vrot.lane.b32.xlu1 %v242_v7, %s933_s24 }
   0xe   : > { %s793_s19 = sshll.u32 %s1202_s16, 4 }
   0xf   : > { %s192_s22 = scalar_lea.vmem %s1196_s0, %s793_s19  ;;  %s197_s26 = scalar_lea.vmem %s1200_s4, %s793_s19 }
  0x10   : > { %v205_v6 = vld [vmem:[%s192_s22] sm:$0xff]  ;;  %v206_v8 = vld [vmem:[%s192_s22 + $0x8] sm:$0xff] }
  0x11   : > { %209 = vrot.lane.b32.xlu0 %v205_v6, %s932_s23  ;;  %249 = vrot.lane.b32.xlu1 %v246_v9, %s933_s24 }
  0x15   : > { %211 = vrot.lane.b32.xlu0 %v206_v8, %s932_s23  ;;  %261 = vrot.lane.b32.xlu1 %v999_v12, %s934_s27 }
  0x19   : > { %259 = vrot.lane.b32.xlu0 %v997_v11, %s934_s27  ;;  %273 = vrot.lane.b32.xlu1 %v246_v9, %s935_s28 }
  0x1d   : > { %271 = vrot.lane.b32.xlu0 %v242_v7, %s935_s28  ;;  %285 = vrot.lane.b32.xlu1 %v999_v12, %s936_s29 }
  0x21   : > { %283 = vrot.lane.b32.xlu0 %v997_v11, %s936_s29  ;;  %297 = vrot.lane.b32.xlu1 %v246_v9, %s937_s30 }
  0x25   : > { %295 = vrot.lane.b32.xlu0 %v242_v7, %s937_s30 }
  0x7f   : > { %v1006_v14 = vpop.permute.xlu1 %247 }
  0x83   : > { %v210_v13 = vpop.permute.xlu0 %209  ;;  %v1009_v16 = vpop.permute.xlu1 %249 }
  0x84   : > { %219 = vst.msk [vmem:[#allocation2] sm:$0xff] %vm218_vm1, %v210_v13  ;;  %v1053_v34 = vsel %vm251_vm5, %v1006_v14, %v1009_v16 }
  0x87   : > { %v212_v15 = vpop.permute.xlu0 %211  ;;  %v1015_v19 = vpop.permute.xlu1 %261 }
  0x88   : > { %221 = vst.msk [vmem:[#allocation2 + $0x10] sm:$0xff] %vm213_vm2, %v212_v15  ;;  %v1024_v21 = vsel %vm213_vm2, %v210_v13, %v212_v15 }
  0x89   : > { %v257_v37 = vmul.f32 %v1053_v34, %v1024_v21  ;;  %v236_v62 = vmul.f32 %v999_v12, %v1024_v21 }
  0x8b   : > { %v1011_v17 = vld [vmem:[#allocation2] sm:$0xff]  ;;  %v1013_v18 = vpop.permute.xlu0 %259  ;;  %v1028_v24 = vpop.permute.xlu1 %273 }
  0x8c   : > { %348 = vrot.lane.b32.xlu0 %v1011_v17, %s938_s5  ;;  %309 = vrot.lane.b32.xlu1 %v1011_v17, %s939_s6  ;;  %v268_v20 = vmul.f32 %v1013_v18, %v1011_v17  ;;  %v1034_v26 = vsel %vm263_vm3, %v1013_v18, %v1015_v19  ;;  %v256_v35 = vmul.f32 %v1006_v14, %v1011_v17 }
  0x8d   : > { %v269_v30 = vmul.f32 %v1034_v26, %v1024_v21  ;;  %v235_v63 = vmul.f32 %v997_v11, %v1011_v17 }
  0x8f   : > { %v237_v22 = vld [vmem:[#allocation2 + $0x10] sm:$0xff]  ;;  %v1026_v23 = vpop.permute.xlu0 %271  ;;  %v1063_v39 = vpop.permute.xlu1 %285 }
  0x90   : > { %337 = vrot.lane.b32.xlu1 %v268_v20, %s940_s7  ;;  %v851_v25 = vpack.i.bf16 %v237_v22, %v1024_v21  ;;  %v270_v27 = vmul.f32 %v1015_v19, %v237_v22  ;;  %v280_v28 = vmul.f32 %v1026_v23, %v1011_v17  ;;  %v1042_v29 = vsel %vm275_vm4, %v1026_v23, %v1028_v24 }
  0x91   : > { %v281_v31 = vmul.f32 %v1042_v29, %v1024_v21  ;;  %v282_v32 = vmul.f32 %v1028_v24, %v237_v22  ;;  %v258_v36 = vmul.f32 %v1009_v16, %v237_v22  ;;  %v294_v45 = vmul.f32 %v1063_v39, %v237_v22 }
  0x92   : > { %852 = vrot.lane.b32.xlu0 %v851_v25, %s939_s6  ;;  %v866_v33 = vpack.i.bf16 %v270_v27, %v269_v30 }
  0x93   : > { %v1061_v38 = vpop.permute.xlu0 %283  ;;  %v871_v40 = vpack.i.bf16 %v282_v32, %v281_v31  ;;  %v861_v41 = vpack.i.bf16 %v258_v36, %v257_v37  ;;  %v1080_v47 = vpop.permute.xlu1 %297 }
  0x94   : > { %362 = vrot.lane.b32.xlu1 %v280_v28, %s941_s8  ;;  %v1069_v42 = vsel %vm287_vm6, %v1061_v38, %v1063_v39  ;;  %v292_v43 = vmul.f32 %v1061_v38, %v1011_v17  ;;  %v305_v51 = vmul.f32 %v1080_v47, %v237_v22 }
  0x95   : > { %v293_v44 = vmul.f32 %v1069_v42, %v1024_v21 }
  0x96   : > { %857 = vrot.lane.b32.xlu0 %v851_v25, %s938_s5 }
  0x97   : > { %v1078_v46 = vpop.permute.xlu0 %295  ;;  %v881_v48 = vpack.i.bf16 %v294_v45, %v293_v44 }
  0x98   : > { %867 = vrot.lane.b32.xlu1 %v866_v33, %s940_s7  ;;  %v1088_v49 = vsel %vm200_vm0, %v1078_v46, %v1080_v47  ;;  %v303_v54 = vmul.f32 %v1078_v46, %v1011_v17 }
  0x99   : > { %v304_v52 = vmul.f32 %v1088_v49, %v1024_v21 }
  0x9a   : > { %323 = vrot.lane.b32.xlu0 %v256_v35, %s942_s9 }
  0x9c   : > { %872 = vrot.lane.b32.xlu1 %v871_v40, %s941_s8 }
  0x9e   : > { %862 = vrot.lane.b32.xlu0 %v861_v41, %s942_s9 }
  0xa0   : > { %877 = vrot.lane.b32.xlu1 %v851_v25, %s943_s10 }
  0xa2   : > { %376 = vrot.lane.b32.xlu0 %v292_v43, %s944_s11 }
  0xa4   : > { %387 = vrot.lane.b32.xlu1 %v1011_v17, %s943_s10 }
  0xa6   : > { %882 = vrot.lane.b32.xlu0 %v881_v48, %s944_s11 }
  0xa8   : > { %405 = vrot.lane.b32.xlu1 %v305_v51, %s946_s12 }
  0xaa   : > { %403 = vrot.lane.b32.xlu0 %v304_v52, %s946_s12 }
  0xac   : > { %416 = vperm.xlu1 %886, %v413_v53  }
  0xae   : > { %401 = vrot.lane.b32.xlu0 %v303_v54, %s946_s12 }
  0xfe   : > { %v310_v55 = vpop.permute.xlu1 %309  ;;  %v349_v56 = vpop.permute.xlu0 %348 }
 0x102   : > { %v338_v57 = vpop.permute.xlu1 %337 }
 0x104   : > { %v853_v58 = vpop.permute.xlu0 %852 }
 0x105   : > { %v855_v59 = vunpack.i.h.bf16 %v853_v58  ;;  %v854_v60 = vunpack.i.l.bf16 %v853_v58 }
 0x106   : > { %v363_v61 = vpop.permute.xlu1 %362 }
 0x107   : > { %v317_v0 = vsel %vm315_vm7, %v854_v60, %v855_v59  ;;  %v316_v1 = vsel %vm315_vm7, %v310_v55, %v854_v60 }
 0x108   : > { %v858_v2 = vpop.permute.xlu0 %857  ;;  %v795_v3 = vpack.c.bf16 %v317_v0, %v236_v62  ;;  %v797_v4 = vpack.c.bf16 %v316_v1, %v235_v63  ;;  %v412_v1 = vld [vmem:[%s1197_s1] sm:$0xff] }
 0x109   : > { %v860_v17 = vunpack.i.h.bf16 %v858_v2  ;;  %v859_v20 = vunpack.i.l.bf16 %v858_v2 }
 0x10a   : > { %v868_v5 = vpop.permute.xlu1 %867  ;;  %796 = vmatprep.subr.bf16.mxu0 %v795_v3 }
 0x10b   : > { %798 = vmatpush1.bf16.msra.mxu0 %v797_v4  ;;  %v870_v7 = vunpack.i.h.bf16 %v868_v5  ;;  %v869_v8 = vunpack.i.l.bf16 %v868_v5  ;;  %v356_v37 = vsel %vm354_vm11, %v859_v20, %v860_v17  ;;  %v355_v50 = vsel %vm354_vm11, %v349_v56, %v859_v20 }
 0x10c   : > { %v324_v6 = vpop.permute.xlu0 %323 }
 0x10d   : > { %v345_v27 = vsel %vm343_vm8, %v869_v8, %v870_v7  ;;  %v344_v31 = vsel %vm343_vm8, %v338_v57, %v869_v8 }
 0x10e   : > { %v873_v9 = vpop.permute.xlu1 %872 }
 0x10f   : > { %v875_v10 = vunpack.i.h.bf16 %v873_v9  ;;  %v874_v13 = vunpack.i.l.bf16 %v873_v9 }
 0x110   : > { %v863_v15 = vpop.permute.xlu0 %862 }
 0x111   : > { %v865_v21 = vunpack.i.h.bf16 %v863_v15  ;;  %v864_v22 = vunpack.i.l.bf16 %v863_v15  ;;  %v370_v32 = vsel %vm368_vm10, %v874_v13, %v875_v10  ;;  %v369_v41 = vsel %vm368_vm10, %v363_v61, %v874_v13 }
 0x112   : > { %v878_v25 = vpop.permute.xlu1 %877  ;;  %v803_v40 = vpack.c.bf16 %v370_v32, %v356_v37  ;;  %v805_v53 = vpack.c.bf16 %v369_v41, %v355_v50 }
 0x113   : > { %v331_v28 = vsel %vm329_vm9, %v864_v22, %v865_v21  ;;  %v330_v30 = vsel %vm329_vm9, %v324_v6, %v864_v22  ;;  %v880_v43 = vunpack.i.h.bf16 %v878_v25  ;;  %v879_v44 = vunpack.i.l.bf16 %v878_v25 }
 0x114   : > { %v377_v33 = vpop.permute.xlu0 %376  ;;  %v799_v35 = vpack.c.bf16 %v345_v27, %v331_v28  ;;  %v801_v36 = vpack.c.bf16 %v344_v31, %v330_v30 }
 0x115   : > { %v395_v57 = vsel %vm393_vm12, %v879_v44, %v880_v43 }
 0x116   : > { %800 = vmatprep.subr.bf16.mxu0 %v799_v35  ;;  %v388_v45 = vpop.permute.xlu1 %387 }
 0x117   : > { %802 = vmatpush1.bf16.msra.mxu0 %v801_v36  ;;  %v394_v54 = vsel %vm393_vm12, %v388_v45, %v879_v44 }
 0x118   : > { %v883_v48 = vpop.permute.xlu0 %882  ;;  %804 = vmatprep.subr.bf16.mxu0 %v803_v40 }
 0x119   : > { %v885_v51 = vunpack.i.h.bf16 %v883_v48  ;;  %v884_v52 = vunpack.i.l.bf16 %v883_v48 }
 0x11a   : > { %v406_v62 = vpop.permute.xlu1 %405 }
 0x11b   : > { %806 = vmatpush1.bf16.msra.mxu0 %v805_v53  ;;  %v384_v55 = vsel %vm382_vm13, %v884_v52, %v885_v51  ;;  %v383_v58 = vsel %vm382_vm13, %v377_v33, %v884_v52 }
 0x11c   : > { %v404_v59 = vpop.permute.xlu0 %403  ;;  %v807_v60 = vpack.c.bf16 %v395_v57, %v384_v55  ;;  %v809_v61 = vpack.c.bf16 %v394_v54, %v383_v58 }
 0x11d   : > { %v409_v56 = vsel %vm407_vm14, %v404_v59, %v406_v62 }
 0x11e   : > { %808 = vmatprep.subr.bf16.mxu0 %v807_v60 }
 0x11f   : > { %810 = vmatpush1.bf16.msra.mxu0 %v809_v61 }
 0x120   : > { %v402_v63 = vpop.permute.xlu0 %401  ;;  %439 = vmatprep.subr.mxu0 %v409_v56 }
 0x121   : > { %v408_v0 = vsel %vm407_vm14, %v402_v63, %v404_v59 }
 0x123   : > { %440 = vmatpush1.msra.mxu0 %v408_v0 }
 0x124   : > { %787 = vmatmul.mubr.msk.f32.vlgmr.msra.gmra.mrb[0].mxu0 %vm419_vm15, %v412_v1 }
 0x12b   : > { %v417_v2 = vpop.permute.xlu1 %416 }
 0x1f7   : > { %v489_v3 = vpop.f32.mrb[0].mxu0 }
 0x1f8   : > { %v490_v4 = vadd.f32 %v489_v3, %v417_v2  ;;  %v491_v5 = vpop.f32.mrb[1].mxu0 }
 0x1f9   : > { %v492_v6 = vadd.f32 %v491_v5, %v417_v2 }
 0x1fa   : > { %v496_v7 = vmul.f32 0.01, %v490_v4  ;;  %vm494_vm0 = vcmp.ge.f32.partialorder %v490_v4, 0.0 }
 0x1fb   : > { %v497_v8 = vmul.f32 0.01, %v492_v6  ;;  %vm495_vm3 = vcmp.ge.f32.partialorder %v492_v6, 0.0 }
 0x1fc   : > { %v498_v9 = vsel %vm494_vm0, %v490_v4, %v496_v7 }
 0x1fd   : > { %502 = vrot.lane.b32.xlu0 %v498_v9, %s932_s23  ;;  %v499_v10 = vsel %vm495_vm3, %v492_v6, %v497_v8 }
 0x1fe   : > { %504 = vrot.lane.b32.xlu1 %v499_v10, %s932_s23 }
 0x26f   : > { %v503_v13 = vpop.permute.xlu0 %502 }
 0x270   : > { %510 = vst.msk [vmem:[#allocation2] sm:$0xff] %vm218_vm1, %v503_v13  ;;  %v505_v15 = vpop.permute.xlu1 %504 }
 0x271   : > { %v506_v17 = vsel %vm213_vm2, %v503_v13, %v505_v15  ;;  %512 = vst.msk [vmem:[#allocation2 + $0x10] sm:$0xff] %vm213_vm2, %v505_v15 }
 0x272   : > { %v522_v31 = vmul.f32 %v506_v17, %v1034_v26 }
 0x277   : > { %v513_v20 = vld [vmem:[#allocation2] sm:$0xff] }
 0x278   : > { %572 = vrot.lane.b32.xlu0 %v513_v20, %s938_s5  ;;  %536 = vrot.lane.b32.xlu1 %v513_v20, %s939_s6  ;;  %v517_v21 = vld [vmem:[#allocation2 + $0x10] sm:$0xff]  ;;  %v521_v25 = vmul.f32 %v513_v20, %v1013_v18  ;;  %v524_v27 = vmul.f32 %v513_v20, %v1026_v23  ;;  %v518_v28 = vmul.f32 %v513_v20, %v1006_v14 }
 0x279   : > { %v887_v22 = vpack.i.bf16 %v517_v21, %v506_v17  ;;  %v523_v30 = vmul.f32 %v517_v21, %v1015_v19  ;;  %v526_v33 = vmul.f32 %v517_v21, %v1028_v24  ;;  %v520_v18 = vmul.f32 %v517_v21, %v1009_v16 }
 0x27a   : > { %v525_v23 = vmul.f32 %v506_v17, %v1042_v29  ;;  %v519_v14 = vmul.f32 %v506_v17, %v1053_v34  ;;  %v527_v26 = vmul.f32 %v513_v20, %v1061_v38  ;;  %v529_v24 = vmul.f32 %v517_v21, %v1063_v39  ;;  %v789_v38 = vld [vmem:[%s1198_s2 + $0x8] sm:$0xff] }
 0x27b   : > { %v902_v32 = vpack.i.bf16 %v523_v30, %v522_v31  ;;  %v528_v16 = vmul.f32 %v506_v17, %v1069_v42  ;;  %v532_v29 = vmul.f32 %v517_v21, %v1080_v47  ;;  %v531_v34 = vmul.f32 %v506_v17, %v1088_v49 }
 0x27c   : > { %562 = vrot.lane.b32.xlu1 %v521_v25, %s940_s7  ;;  %888 = vrot.lane.b32.xlu0 %v887_v22, %s939_s6  ;;  %v907_v19 = vpack.i.bf16 %v526_v33, %v525_v23  ;;  %v897_v35 = vpack.i.bf16 %v520_v18, %v519_v14  ;;  %v530_v39 = vmul.f32 %v513_v20, %v1078_v46 }
 0x27d   : > { %v917_v36 = vpack.i.bf16 %v529_v24, %v528_v16  ;;  %v516_v49 = vmul.f32 %v506_v17, %v999_v12  ;;  %v515_v44 = vmul.f32 %v513_v20, %v997_v11  ;;  %v788_v24 = vld [vmem:[%s1197_s1 + $0x8] sm:$0xff] }
 0x280   : > { %585 = vrot.lane.b32.xlu1 %v524_v27, %s941_s8  ;;  %549 = vrot.lane.b32.xlu0 %v518_v28, %s942_s9 }
 0x284   : > { %893 = vrot.lane.b32.xlu0 %v887_v22, %s938_s5  ;;  %903 = vrot.lane.b32.xlu1 %v902_v32, %s940_s7 }
 0x288   : > { %908 = vrot.lane.b32.xlu1 %v907_v19, %s941_s8  ;;  %898 = vrot.lane.b32.xlu0 %v897_v35, %s942_s9 }
 0x28c   : > { %913 = vrot.lane.b32.xlu1 %v887_v22, %s943_s10  ;;  %598 = vrot.lane.b32.xlu0 %v527_v26, %s944_s11 }
 0x290   : > { %608 = vrot.lane.b32.xlu1 %v513_v20, %s943_s10  ;;  %918 = vrot.lane.b32.xlu0 %v917_v36, %s944_s11 }
 0x294   : > { %625 = vrot.lane.b32.xlu1 %v532_v29, %s946_s12  ;;  %623 = vrot.lane.b32.xlu0 %v531_v34, %s946_s12 }
 0x298   : > { %637 = vperm.xlu1 %886, %v789_v38   ;;  %621 = vrot.lane.b32.xlu0 %v530_v39, %s946_s12 }
 0x2ea   : > { %v573_v42 = vpop.permute.xlu0 %572  ;;  %v537_v37 = vpop.permute.xlu1 %536 }
 0x2ee   : > { %v563_v40 = vpop.permute.xlu1 %562  ;;  %v889_v41 = vpop.permute.xlu0 %888 }
 0x2ef   : > { %v891_v47 = vunpack.i.h.bf16 %v889_v41  ;;  %v890_v43 = vunpack.i.l.bf16 %v889_v41 }
 0x2f1   : > { %v543_v45 = vsel %vm315_vm7, %v890_v43, %v891_v47  ;;  %v542_v48 = vsel %vm315_vm7, %v537_v37, %v890_v43 }
 0x2f2   : > { %v586_v50 = vpop.permute.xlu1 %585  ;;  %v550_v51 = vpop.permute.xlu0 %549  ;;  %v811_v46 = vpack.c.bf16 %v543_v45, %v516_v49  ;;  %v813_v52 = vpack.c.bf16 %v542_v48, %v515_v44 }
 0x2f4   : > { %812 = vmatprep.subr.bf16.mxu1 %v811_v46 }
 0x2f5   : > { %814 = vmatpush1.bf16.msra.mxu1 %v813_v52 }
 0x2f6   : > { %v894_v53 = vpop.permute.xlu0 %893  ;;  %v904_v54 = vpop.permute.xlu1 %903 }
 0x2f7   : > { %v906_v55 = vunpack.i.h.bf16 %v904_v54  ;;  %v905_v57 = vunpack.i.l.bf16 %v904_v54  ;;  %v896_v58 = vunpack.i.h.bf16 %v894_v53  ;;  %v895_v59 = vunpack.i.l.bf16 %v894_v53 }
 0x2f9   : > { %v569_v63 = vsel %vm343_vm8, %v905_v57, %v906_v55  ;;  %v568_v2 = vsel %vm343_vm8, %v563_v40, %v905_v57  ;;  %v579_v8 = vsel %vm354_vm11, %v895_v59, %v896_v58  ;;  %v578_v21 = vsel %vm354_vm11, %v573_v42, %v895_v59 }
 0x2fa   : > { %v909_v60 = vpop.permute.xlu1 %908  ;;  %v899_v12 = vpop.permute.xlu0 %898 }
 0x2fb   : > { %v911_v61 = vunpack.i.h.bf16 %v909_v60  ;;  %v910_v11 = vunpack.i.l.bf16 %v909_v60  ;;  %v901_v62 = vunpack.i.h.bf16 %v899_v12  ;;  %v900_v56 = vunpack.i.l.bf16 %v899_v12 }
 0x2fd   : > { %v556_v0 = vsel %vm329_vm9, %v900_v56, %v901_v62  ;;  %v555_v1 = vsel %vm329_vm9, %v550_v51, %v900_v56  ;;  %v592_v3 = vsel %vm368_vm10, %v910_v11, %v911_v61  ;;  %v591_v10 = vsel %vm368_vm10, %v586_v50, %v910_v11 }
 0x2fe   : > { %v914_v4 = vpop.permute.xlu1 %913  ;;  %v599_v5 = vpop.permute.xlu0 %598  ;;  %v815_v6 = vpack.c.bf16 %v569_v63, %v556_v0  ;;  %v817_v7 = vpack.c.bf16 %v568_v2, %v555_v1  ;;  %v819_v9 = vpack.c.bf16 %v592_v3, %v579_v8  ;;  %v821_v27 = vpack.c.bf16 %v591_v10, %v578_v21 }
 0x2ff   : > { %v916_v13 = vunpack.i.h.bf16 %v914_v4  ;;  %v915_v15 = vunpack.i.l.bf16 %v914_v4 }
 0x300   : > { %816 = vmatprep.subr.bf16.mxu1 %v815_v6 }
 0x301   : > { %818 = vmatpush1.bf16.msra.mxu1 %v817_v7  ;;  %v615_v31 = vsel %vm393_vm12, %v915_v15, %v916_v13 }
 0x302   : > { %v609_v17 = vpop.permute.xlu1 %608  ;;  %v919_v20 = vpop.permute.xlu0 %918  ;;  %820 = vmatprep.subr.bf16.mxu1 %v819_v9 }
 0x303   : > { %v921_v22 = vunpack.i.h.bf16 %v919_v20  ;;  %v920_v25 = vunpack.i.l.bf16 %v919_v20  ;;  %v614_v28 = vsel %vm393_vm12, %v609_v17, %v915_v15 }
 0x305   : > { %822 = vmatpush1.bf16.msra.mxu1 %v821_v27  ;;  %v605_v30 = vsel %vm382_vm13, %v920_v25, %v921_v22  ;;  %v604_v32 = vsel %vm382_vm13, %v599_v5, %v920_v25 }
 0x306   : > { %v626_v33 = vpop.permute.xlu1 %625  ;;  %v624_v18 = vpop.permute.xlu0 %623  ;;  %v823_v23 = vpack.c.bf16 %v615_v31, %v605_v30  ;;  %v825_v14 = vpack.c.bf16 %v614_v28, %v604_v32 }
 0x307   : > { %v628_v19 = vsel %vm407_vm14, %v624_v18, %v626_v33 }
 0x308   : > { %824 = vmatprep.subr.bf16.mxu1 %v823_v23 }
 0x309   : > { %826 = vmatpush1.bf16.msra.mxu1 %v825_v14 }
 0x30a   : > { %v622_v35 = vpop.permute.xlu0 %621  ;;  %659 = vmatprep.subr.mxu1 %v628_v19 }
 0x30b   : > { %v627_v26 = vsel %vm407_vm14, %v622_v35, %v624_v18 }
 0x30d   : > { %660 = vmatpush1.msra.mxu1 %v627_v26 }
 0x30e   : > { %790 = vmatmul.mubr.msk.f32.vlgmr.msra.gmra.mrb[0].mxu1 %vm419_vm15, %v788_v24 }
 0x317   : > { %v638_v16 = vpop.permute.xlu1 %637 }
 0x3e1   : > { %v709_v36 = vpop.f32.mrb[0].mxu1 }
 0x3e2   : > { %v710_v29 = vadd.f32 %v709_v36, %v638_v16  ;;  %v711_v34 = vpop.f32.mrb[1].mxu1 }
 0x3e3   : > { %v712_v38 = vadd.f32 %v711_v34, %v638_v16 }
 0x3e4   : > { %vm714_vm1 = vcmp.ge.f32.partialorder %v710_v29, 0.0  ;;  %v716_v39 = vmul.f32 0.01, %v710_v29 }
 0x3e5   : > { %vm715_vm2 = vcmp.ge.f32.partialorder %v712_v38, 0.0  ;;  %v717_v42 = vmul.f32 0.01, %v712_v38 }
 0x3e6   : > { %v718_v37 = vsel %vm714_vm1, %v710_v29, %v716_v39 }
 0x3e7   : > { %720 = vst [vmem:[%s197_s26] sm:$0xff] %v718_v37  ;;  %v719_v40 = vsel %vm715_vm2, %v712_v38, %v717_v42 }
 0x3e8   : > { %721 = vst [vmem:[%s197_s26 + $0x8] sm:$0xff] %v719_v40 }
 0x3e9 PF: > { %s14_s15 = sadd.s32 1, %s929_s15  }
 0x3ea   : > { %p11_p4 = scmp.ge.s32.totalorder %s14_s15, 4  }
 0x3ec   :  { %13 = sbr.rel (!%p11_p4) target bundleno = 1 (0x1), region = 69 }

</bundles_post_ra>
